<compile_context>
chip_gen: v6e
topology: v6e:2x2x1
jax: 0.10.0
libtpu: 0.0.40
codegen_flags: <defaults>
</compile_context>

<pallas_src>
import functools

import jax
import jax.numpy as jnp
from jax.experimental import pallas as pl
from jax.experimental.pallas import tpu as pltpu

F32 = jnp.float32
BF16 = jnp.bfloat16


def _round_up(x, m):
    return (x + m - 1) // m * m


# ----------------------------------------------------------------------------
# Fused FPN kernel:  y = ReLU(x @ W1 + b1) @ W2 + b2     (dropout is identity in eval)
# ----------------------------------------------------------------------------
def _fpn_fused_kernel(x_ref, w1_ref, b1_ref, w2_ref, b2_ref, o_ref):
    # x:  (TB, Kp)    bf16
    # w1: (Kp, H1p)   bf16     b1: (1, H1p)  f32
    # w2: (H1p, H2p)  f32      b2: (1, H2p)  f32
    # o:  (TB, H2p)   f32
    h = jnp.dot(x_ref[...], w1_ref[...], preferred_element_type=jnp.float32)
    h = jnp.maximum(h + b1_ref[...], 0.0)          # fc1 -> dropout(identity) -> ReLU
    o_ref[...] = (
        jnp.dot(h, w2_ref[...], preferred_element_type=jnp.float32) + b2_ref[...]
    )                                               # fc2 (f32 LHS/RHS, f32 acc)


# ----------------------------------------------------------------------------
# One-time parameter prep: pad weights/biases to lane-dense layout (done ONCE,
# outside the per-call path).
# ----------------------------------------------------------------------------
def prepare_fpn_params(w1, b1, w2, b2):
    fp_dim, fp_2_dim = w1.shape
    hidden = w2.shape[1]
    Kp = _round_up(fp_dim, 128)
    H1p = _round_up(fp_2_dim, 128)
    H2p = _round_up(hidden, 128)
    return {
        # Big contraction weight stays bf16 (exact 0/1 activations, f32 MXU acc).
        "w1": jnp.zeros((Kp, H1p), BF16).at[:fp_dim, :fp_2_dim].set(w1.astype(BF16)),
        "b1": jnp.zeros((1, H1p), F32).at[0, :fp_2_dim].set(b1.astype(F32)),
        # Small second-layer weight kept in f32 for accuracy (64 KiB padded).
        "w2": jnp.zeros((H1p, H2p), F32).at[:fp_2_dim, :hidden].set(w2.astype(F32)),
        "b2": jnp.zeros((1, H2p), F32).at[0, :hidden].set(b2.astype(F32)),
        "hidden": hidden,
    }


# ----------------------------------------------------------------------------
# Jitted per-call forward: pad activation -> one fused pallas_call -> slice.
# ----------------------------------------------------------------------------
@functools.partial(jax.jit, static_argnames=("hidden",))
def _fpn_apply(fp, w1_p, b1_p, w2_p, b2_p, *, hidden):
    B, fp_dim = fp.shape
    Kp, H1p = w1_p.shape
    H2p = w2_p.shape[1]

    # Batch tiling: single step for small batches; 256-row MXU-shaped tiles (and >= 2
    # 'parallel' grid steps, usable by v7x's 2 TensorCores) for large batches.
    B8 = _round_up(max(B, 1), 8)
    tile_b = min(B8, 256)
    Bp = _round_up(B, tile_b)

    x_p = jnp.zeros((Bp, Kp), BF16).at[:B, :fp_dim].set(fp.astype(BF16))

    cost = pl.CostEstimate(
        flops=2 * Bp * Kp * H1p + 2 * Bp * H1p * H2p,
        transcendentals=0,
        bytes_accessed=(
            Bp * Kp * 2            # x (bf16)
            + Kp * H1p * 2         # W1 (bf16)
            + H1p * 4 + H2p * 4    # biases (f32)
            + H1p * H2p * 4        # W2 (f32)
            + Bp * H2p * 4         # out (f32)
        ),
    )

    out_p = pl.pallas_call(
        _fpn_fused_kernel,
        grid=(Bp // tile_b,),
        in_specs=[
            pl.BlockSpec((tile_b, Kp), lambda i: (i, 0)),   # x row-tile
            pl.BlockSpec((Kp, H1p), lambda i: (0, 0)),      # W1 (resident)
            pl.BlockSpec((1, H1p), lambda i: (0, 0)),       # b1
            pl.BlockSpec((H1p, H2p), lambda i: (0, 0)),     # W2 (resident)
            pl.BlockSpec((1, H2p), lambda i: (0, 0)),       # b2
        ],
        out_specs=pl.BlockSpec((tile_b, H2p), lambda i: (i, 0)),
        out_shape=jax.ShapeDtypeStruct((Bp, H2p), F32),
        compiler_params=pltpu.CompilerParams(
            dimension_semantics=("parallel",),
        ),
        cost_estimate=cost,
    )(x_p, w1_p, b1_p, w2_p, b2_p)

    return out_p[:B, :hidden]


def fpn_forward(fp, prepped):
    """FPN forward on a (B, fp_dim) fingerprint tensor; returns (B, hidden) float32."""
    return _fpn_apply(
        fp, prepped["w1"], prepped["b1"], prepped["w2"], prepped["b2"],
        hidden=prepped["hidden"],
    )


# ----------------------------------------------------------------------------
# Parameter init (matches torch.nn.Linear default: U(-1/sqrt(fan_in), 1/sqrt(fan_in)))
# ----------------------------------------------------------------------------
def init_params(key, fp_dim, fp_2_dim, hidden):
    k1, k2, k3, k4 = jax.random.split(key, 4)
    s1 = 1.0 / (fp_dim ** 0.5)
    s2 = 1.0 / (fp_2_dim ** 0.5)
    return {
        "fc1_w": jax.random.uniform(k1, (fp_dim, fp_2_dim), F32, -s1, s1),
        "fc1_b": jax.random.uniform(k2, (fp_2_dim,), F32, -s1, s1),
        "fc2_w": jax.random.uniform(k3, (fp_2_dim, hidden), F32, -s2, s2),
        "fc2_b": jax.random.uniform(k4, (hidden,), F32, -s2, s2),
    }


# ----------------------------------------------------------------------------
# Main
# ----------------------------------------------------------------------------
if __name__ == "__main__":
    # fp_type == 'mixed' -> fp_dim = 1489 (MACCS + ErG + PubChem).
    fp_dim = 1489
    fp_2_dim = 64
    hidden = 100
    B = 2

    key = jax.random.PRNGKey(0)
    k_par, k_fp = jax.random.split(key)

    params = init_params(k_par, fp_dim, fp_2_dim, hidden)

    # One-time padded-parameter prep (hoisted out of the per-call path).
    prepped = prepare_fpn_params(
        params["fc1_w"], params["fc1_b"], params["fc2_w"], params["fc2_b"]
    )

    # TODO(synk): fingerprints would come from RDKit on SMILES strings; use synthetic bits.
    fp = (jax.random.uniform(k_fp, (B, fp_dim)) < 0.1).astype(F32)

    out = fpn_forward(fp, prepped)
    jax.block_until_ready(out)

    assert out.shape == (B, hidden)

    # Pure-JAX f32 reference (fc1 uses bf16 operands in-kernel, fc2 is f32).
    ref = jnp.maximum(fp @ params["fc1_w"] + params["fc1_b"], 0.0)
    ref = ref @ params["fc2_w"] + params["fc2_b"]
    max_err = float(jnp.max(jnp.abs(out - ref)))
    assert max_err < 2e-2, f"max abs error {max_err}"

    print("KERNEL_OK")
</pallas_src>

<mosaic_0001>
module attributes {stable_mosaic.version = 11 : i64} {
  func.func @_fpn_fused_kernel(%arg0: i32, %arg1: memref<8x1536xbf16, #tpu.memory_space<vmem>>, %arg2: memref<1536x128xbf16, #tpu.memory_space<vmem>>, %arg3: memref<1x128xf32, #tpu.memory_space<vmem>>, %arg4: memref<128x128xf32, #tpu.memory_space<vmem>>, %arg5: memref<1x128xf32, #tpu.memory_space<vmem>>, %arg6: memref<8x128xf32, #tpu.memory_space<vmem>>) attributes {dimension_semantics = [#tpu.dimension_semantics<parallel>], iteration_bounds = array<i64: 1>, scalar_prefetch = 0 : i64, scratch_operands = 0 : i64, tpu.core_type = #tpu.core_type<tc>, window_params = [{transform_indices = @transform_0, window_bounds = array<i64: 8, 1536>}, {pipeline_mode = #tpu.pipeline_mode<synchronous>, transform_indices = @transform_1, window_bounds = array<i64: 1536, 128>}, {pipeline_mode = #tpu.pipeline_mode<synchronous>, transform_indices = @transform_2, window_bounds = array<i64: 1, 128>}, {pipeline_mode = #tpu.pipeline_mode<synchronous>, transform_indices = @transform_3, window_bounds = array<i64: 128, 128>}, {pipeline_mode = #tpu.pipeline_mode<synchronous>, transform_indices = @transform_4, window_bounds = array<i64: 1, 128>}, {transform_indices = @transform_5, window_bounds = array<i64: 8, 128>}]} {
    %c0 = arith.constant 0 : index
    %c0_0 = arith.constant 0 : index
    %0 = vector.load %arg1[%c0, %c0_0] : memref<8x1536xbf16, #tpu.memory_space<vmem>>, vector<8x1536xbf16>
    %c0_1 = arith.constant 0 : index
    %c0_2 = arith.constant 0 : index
    %1 = vector.load %arg2[%c0_1, %c0_2] : memref<1536x128xbf16, #tpu.memory_space<vmem>>, vector<1536x128xbf16>
    %cst = arith.constant dense<0.000000e+00> : vector<8x128xf32>
    %2 = tpu.matmul %0, %1, %cst {dimension_numbers = #tpu.dot_dimension_numbers<[1], [0], [0], [1], [0, 0, 1, 1], [], []>} : vector<8x1536xbf16>, vector<1536x128xbf16>, vector<8x128xf32> -> vector<8x128xf32>
    %c0_3 = arith.constant 0 : index
    %c0_4 = arith.constant 0 : index
    %3 = vector.load %arg3[%c0_3, %c0_4] : memref<1x128xf32, #tpu.memory_space<vmem>>, vector<1x128xf32>
    %4 = vector.broadcast %3 : vector<1x128xf32> to vector<8x128xf32>
    %5 = arith.addf %2, %4 : vector<8x128xf32>
    %cst_5 = arith.constant 0.000000e+00 : f32
    %6 = vector.broadcast %cst_5 : f32 to vector<8x128xf32>
    %7 = arith.maximumf %5, %6 : vector<8x128xf32>
    %c0_6 = arith.constant 0 : index
    %c0_7 = arith.constant 0 : index
    %8 = vector.load %arg4[%c0_6, %c0_7] : memref<128x128xf32, #tpu.memory_space<vmem>>, vector<128x128xf32>
    %cst_8 = arith.constant dense<0.000000e+00> : vector<8x128xf32>
    %9 = tpu.matmul %7, %8, %cst_8 {dimension_numbers = #tpu.dot_dimension_numbers<[1], [0], [0], [1], [0, 0, 1, 1], [], []>} : vector<8x128xf32>, vector<128x128xf32>, vector<8x128xf32> -> vector<8x128xf32>
    %c0_9 = arith.constant 0 : index
    %c0_10 = arith.constant 0 : index
    %10 = vector.load %arg5[%c0_9, %c0_10] : memref<1x128xf32, #tpu.memory_space<vmem>>, vector<1x128xf32>
    %11 = vector.broadcast %10 : vector<1x128xf32> to vector<8x128xf32>
    %12 = arith.addf %9, %11 : vector<8x128xf32>
    %c0_11 = arith.constant 0 : index
    %c0_12 = arith.constant 0 : index
    %13 = vector.load %arg6[%c0_11, %c0_12] : memref<8x128xf32, #tpu.memory_space<vmem>>, vector<8x128xf32>
    tpu.vector_store %arg6[%c0_11, %c0_12], %12 {strides = array<i32>} : memref<8x128xf32, #tpu.memory_space<vmem>>, vector<8x128xf32>,
    return
  }
  func.func @transform_0(%arg0: i32) -> (i32, i32) {
    %c0_i32 = arith.constant 0 : i32
    %c0_i32_0 = arith.constant 0 : i32
    return %arg0, %c0_i32 : i32, i32
  }
  func.func @transform_1(%arg0: i32) -> (i32, i32) {
    %c0_i32 = arith.constant 0 : i32
    %c0_i32_0 = arith.constant 0 : i32
    %c0_i32_1 = arith.constant 0 : i32
    return %c0_i32, %c0_i32_0 : i32, i32
  }
  func.func @transform_2(%arg0: i32) -> (i32, i32) {
    %c0_i32 = arith.constant 0 : i32
    %c0_i32_0 = arith.constant 0 : i32
    %c0_i32_1 = arith.constant 0 : i32
    return %c0_i32, %c0_i32_0 : i32, i32
  }
  func.func @transform_3(%arg0: i32) -> (i32, i32) {
    %c0_i32 = arith.constant 0 : i32
    %c0_i32_0 = arith.constant 0 : i32
    %c0_i32_1 = arith.constant 0 : i32
    return %c0_i32, %c0_i32_0 : i32, i32
  }
  func.func @transform_4(%arg0: i32) -> (i32, i32) {
    %c0_i32 = arith.constant 0 : i32
    %c0_i32_0 = arith.constant 0 : i32
    %c0_i32_1 = arith.constant 0 : i32
    return %c0_i32, %c0_i32_0 : i32, i32
  }
  func.func @transform_5(%arg0: i32) -> (i32, i32) {
    %c0_i32 = arith.constant 0 : i32
    %c0_i32_0 = arith.constant 0 : i32
    return %arg0, %c0_i32 : i32, i32
  }
}

</mosaic_0001>

<bundles_post_ra>
// kernel: _fpn_apply.1
= control target key start
LH: loop header
LB: loop body
LE: loop exit
PB: predicated region body
PF: predicated region fallthrough
CT: control target
= control target key end

     0   :  { %10 = vsyncpa [#allocation3], 0  ;;  %s1738_s0 = inlined_call_operand.vmem [shape: bf16[8,1536], index: 0, kind: input, shape index: {}]   ;;  %s1739_s1 = inlined_call_operand.hbm [shape: bf16[1536,128], index: 1, kind: input, shape index: {}]   ;;  %s1740_s2 = inlined_call_operand.vmem [shape: f32[1,128], index: 2, kind: input, shape index: {}]   ;;  %s1741_s3 = inlined_call_operand.hbm [shape: f32[128,128], index: 3, kind: input, shape index: {}]   ;;  %s1742_s4 = inlined_call_operand.vmem [shape: f32[1,128], index: 4, kind: input, shape index: {}]   ;;  %s1743_s5 = inlined_call_operand.vmem [shape: f32[8,128], index: 5, kind: output, shape index: {}]  }
   0x1   :  { %11 = vsyncpa [#allocation5], 0  ;;  %s1667_s18 = smov [#allocation2]  }
   0x2   :  { %s19_s19 = sshll.u32 %s1667_s18, 4  ;;  %s20_s19 = int_to_ptr.vmem [resolvable:$true] %s19_s19 }
   0x3   :  { %s1631_s20 = scalar_lea.vmem %s20_s19, 12288  ;;  %p1636_p1 = scmp.lt.s32.totalorder %s20_s19, %s20_s19 }
   0x4   :  { %p1632_p0 = scmp.ne.s32.totalorder %s20_s19, %s1631_s20  ;;  %p1637_p2 = scmp.lt.s32.totalorder %s1631_s20, %s1631_s20 }
   0x6   :  { %p1638_p3 = por %p1637_p2, %p1636_p1 }
   0x8   :  { %p1639_p4 = pnand %p1638_p3, %p1632_p0 }
   0xa   :  { %1642 = shalt.err (!%p1639_p4)
}
   0xb   :  { %s1668_s21 = smov 64   ;;  %s1669_s22 = smov 4  }
   0xc   :  { %25 = dma.hbm_to_vmem [thread:$0]  %s1739_s1, 12288, %s20_s19, [#allocation3], %s1668_s21, %s1668_s21, %s1669_s22  }
   0xd   :  { %s1670_s25 = smov [#allocation4]  }
   0xe   :  { %s33_s26 = sshll.u32 %s1670_s25, 4  ;;  %s34_s26 = int_to_ptr.vmem [resolvable:$true] %s33_s26 }
   0xf   :  { %s1651_s27 = scalar_lea.vmem %s34_s26, 2048  ;;  %p1656_p6 = scmp.lt.s32.totalorder %s34_s26, %s34_s26 }
  0x10   :  { %p1652_p5 = scmp.ne.s32.totalorder %s34_s26, %s1651_s27  ;;  %p1657_p7 = scmp.lt.s32.totalorder %s1651_s27, %s1651_s27 }
  0x12   :  { %p1658_p8 = por %p1657_p7, %p1656_p6 }
  0x14   :  { %p1659_p9 = pnand %p1658_p8, %p1652_p5 }
  0x16   :  { %1662 = shalt.err (!%p1659_p9)
}
  0x17   :  { %s1671_s28 = smov 128   ;;  %s1672_s29 = smov 8  }
  0x18   :  { %39 = dma.hbm_to_vmem [thread:$0]  %s1741_s3, 2048, %s34_s26, [#allocation5], %s1671_s28, %s1671_s28, %s1672_s29  }
  0x19   :  { %1663 = dma.done.wait [#allocation3], 12288  }
  0x1a   :  { %1664 = vsyncadd [#allocation3], 4294955008 }
  0x1b   :  { %1665 = dma.done.wait [#allocation5], 2048  }
  0x1c   :  { %1666 = vsyncadd [#allocation5], 4294965248  ;;  %v1515_v0 = vld [vmem:[#allocation2 + $0x78] sm:$0xff]   ;;  %v1519_v4 = vld [vmem:[#allocation2 + $0x70] sm:$0xff]   ;;  %vm1674_vm0 = vmmov 0  }
  0x1d   :  { %v1516_v1 = vld [vmem:[#allocation2 + $0xf8] sm:$0xff]   ;;  %1323 = vmatprep.subr.bf16.mxu0 %v1515_v0  ;;  %v1520_v5 = vld [vmem:[#allocation2 + $0xf0] sm:$0xff]   ;;  %v1523_v8 = vld [vmem:[#allocation2 + $0x68] sm:$0xff]  }
  0x1e   :  { %v1517_v2 = vld [vmem:[#allocation2 + $0x38] sm:$0xff]   ;;  %1345 = vmatprep.subr.bf16.mxu1 %v1516_v1  ;;  %v1521_v6 = vld [vmem:[#allocation2 + $0x30] sm:$0xff]   ;;  %v1524_v9 = vld [vmem:[#allocation2 + $0xe8] sm:$0xff]  }
  0x1f   :  { %v1518_v3 = vld [vmem:[#allocation2 + $0xb8] sm:$0xff]   ;;  %1324 = vmatpush3.bf16.msra.mxu0 %v1517_v2  ;;  %v1522_v7 = vld [vmem:[#allocation2 + $0xb0] sm:$0xff]   ;;  %v1525_v10 = vld [vmem:[#allocation2 + $0x28] sm:$0xff]  }
  0x20   :  { %1346 = vmatpush3.bf16.msra.mxu1 %v1518_v3  ;;  %1325 = vmatprep.subr.bf16.mxu0 %v1519_v4  ;;  %v1526_v11 = vld [vmem:[#allocation2 + $0xa8] sm:$0xff]   ;;  %v1527_v12 = vld [vmem:[#allocation2 + $0x60] sm:$0xff]   ;;  %v1531_v16 = vld [vmem:[#allocation2 + $0x58] sm:$0xff]  }
  0x21   :  { %1347 = vmatprep.subr.bf16.mxu1 %v1520_v5  ;;  %v1528_v13 = vld [vmem:[#allocation2 + $0xe0] sm:$0xff]   ;;  %v1532_v17 = vld [vmem:[#allocation2 + $0xd8] sm:$0xff]   ;;  %v1535_v20 = vld [vmem:[#allocation2 + $0x50] sm:$0xff]  }
  0x22   :  { %v1529_v14 = vld [vmem:[#allocation2 + $0x20] sm:$0xff]   ;;  %v1533_v18 = vld [vmem:[#allocation2 + $0x18] sm:$0xff]   ;;  %v1536_v21 = vld [vmem:[#allocation2 + $0xd0] sm:$0xff]  }
  0x23   :  { %1326 = vmatpush3.bf16.msra.mxu0 %v1521_v6  ;;  %v1530_v15 = vld [vmem:[#allocation2 + $0xa0] sm:$0xff]   ;;  %v1534_v19 = vld [vmem:[#allocation2 + $0x98] sm:$0xff]   ;;  %v1537_v22 = vld [vmem:[#allocation2 + $0x10] sm:$0xff]  }
  0x24   :  { %1348 = vmatpush3.bf16.msra.mxu1 %v1522_v7  ;;  %1327 = vmatprep.subr.bf16.mxu0 %v1523_v8  ;;  %v1538_v23 = vld [vmem:[#allocation2 + $0x90] sm:$0xff]   ;;  %v1539_v24 = vld [vmem:[#allocation2 + $0x48] sm:$0xff]   ;;  %v1543_v28 = vld [vmem:[#allocation2 + $0x40] sm:$0xff]  }
  0x25   :  { %1349 = vmatprep.subr.bf16.mxu1 %v1524_v9  ;;  %v1540_v25 = vld [vmem:[#allocation2 + $0xc8] sm:$0xff]   ;;  %v1544_v29 = vld [vmem:[#allocation2 + $0xc0] sm:$0xff]   ;;  %v1551_v38 = vld [vmem:[#allocation2 + $0x178] sm:$0xff]  }
  0x26   :  { %v1541_v26 = vld [vmem:[#allocation2 + $0x8] sm:$0xff]   ;;  %v1545_v30 = vld [vmem:[#allocation2] sm:$0xff]   ;;  %v1552_v39 = vld [vmem:[#allocation2 + $0x1f8] sm:$0xff]  }
  0x27   :  { %1328 = vmatpush3.bf16.msra.mxu0 %v1525_v10  ;;  %v1542_v27 = vld [vmem:[#allocation2 + $0x88] sm:$0xff]   ;;  %v1546_v31 = vld [vmem:[#allocation2 + $0x80] sm:$0xff]   ;;  %v1553_v40 = vld [vmem:[#allocation2 + $0x138] sm:$0xff]  }
  0x28   :  { %1350 = vmatpush3.bf16.msra.mxu1 %v1526_v11  ;;  %1329 = vmatprep.subr.bf16.mxu0 %v1527_v12  ;;  %v49_v32 = vld [vmem:[%s1738_s0] sm:$0xff]  ;;  %v50_v33 = vld [vmem:[%s1738_s0 + $0x8] sm:$0xff]  ;;  %v1554_v41 = vld [vmem:[#allocation2 + $0x1b8] sm:$0xff]  }
  0x29   :  { %1351 = vmatprep.subr.bf16.mxu1 %v1528_v13  ;;  %v1214_v34 = vcombine.low %v49_v32, %v49_v32  ;;  %v1215_v35 = vcombine.high %v49_v32, %v49_v32  ;;  %v1216_v36 = vcombine.low %v50_v33, %v50_v33  ;;  %v1217_v37 = vcombine.high %v50_v33, %v50_v33  ;;  %v1555_v42 = vld [vmem:[#allocation2 + $0x170] sm:$0xff]   ;;  %v1559_v46 = vld [vmem:[#allocation2 + $0x168] sm:$0xff]   ;;  %v1563_v50 = vld [vmem:[#allocation2 + $0x160] sm:$0xff]  }
  0x2a   :  { %v1556_v43 = vld [vmem:[#allocation2 + $0x1f0] sm:$0xff]   ;;  %v1560_v47 = vld [vmem:[#allocation2 + $0x1e8] sm:$0xff]   ;;  %v1564_v51 = vld [vmem:[#allocation2 + $0x1e0] sm:$0xff]  }
  0x2b   :  { %1330 = vmatpush3.bf16.msra.mxu0 %v1529_v14  ;;  %904 = vmatprep.mubr.bf16.mxu0 %v1215_v35  ;;  %v1557_v44 = vld [vmem:[#allocation2 + $0x130] sm:$0xff]   ;;  %v1561_v48 = vld [vmem:[#allocation2 + $0x128] sm:$0xff]   ;;  %v1565_v52 = vld [vmem:[#allocation2 + $0x120] sm:$0xff]  }
  0x2c   :  { %1352 = vmatpush3.bf16.msra.mxu1 %v1530_v15  ;;  %1331 = vmatprep.subr.bf16.mxu0 %v1531_v16  ;;  %v1558_v45 = vld [vmem:[#allocation2 + $0x1b0] sm:$0xff]   ;;  %v1562_v49 = vld [vmem:[#allocation2 + $0x1a8] sm:$0xff]   ;;  %v1566_v53 = vld [vmem:[#allocation2 + $0x1a0] sm:$0xff]  }
  0x2d   :  { %1353 = vmatprep.subr.bf16.mxu1 %v1532_v17  ;;  %944 = vmatprep.mubr.bf16.mxu1 %v1217_v37  ;;  %v1567_v54 = vld [vmem:[#allocation2 + $0x158] sm:$0xff]   ;;  %v1571_v58 = vld [vmem:[#allocation2 + $0x150] sm:$0xff]   ;;  %v1575_v62 = vld [vmem:[#allocation2 + $0x148] sm:$0xff]  }
  0x2e   :  { %v1568_v55 = vld [vmem:[#allocation2 + $0x1d8] sm:$0xff]   ;;  %v1572_v59 = vld [vmem:[#allocation2 + $0x1d0] sm:$0xff]   ;;  %v1576_v63 = vld [vmem:[#allocation2 + $0x1c8] sm:$0xff]  }
  0x2f   :  { %1332 = vmatpush3.bf16.msra.mxu0 %v1533_v18  ;;  %v1569_v56 = vld [vmem:[#allocation2 + $0x118] sm:$0xff]   ;;  %v1573_v60 = vld [vmem:[#allocation2 + $0x110] sm:$0xff]   ;;  %v1577_v0 = vld [vmem:[#allocation2 + $0x108] sm:$0xff]  }
  0x30   :  { %1354 = vmatpush3.bf16.msra.mxu1 %v1534_v19  ;;  %1333 = vmatprep.subr.bf16.mxu0 %v1535_v20  ;;  %v1570_v57 = vld [vmem:[#allocation2 + $0x198] sm:$0xff]   ;;  %v1574_v61 = vld [vmem:[#allocation2 + $0x190] sm:$0xff]   ;;  %v1578_v1 = vld [vmem:[#allocation2 + $0x188] sm:$0xff]  }
  0x31   :  { %1355 = vmatprep.subr.bf16.mxu1 %v1536_v21  ;;  %v1579_v2 = vld [vmem:[#allocation2 + $0x140] sm:$0xff]   ;;  %v51_v6 = vld [vmem:[%s1738_s0 + $0x10] sm:$0xff]  ;;  %v52_v9 = vld [vmem:[%s1738_s0 + $0x18] sm:$0xff] }
  0x32   :  { %v1580_v3 = vld [vmem:[#allocation2 + $0x1c0] sm:$0xff]   ;;  %v1218_v7 = vcombine.low %v51_v6, %v51_v6  ;;  %v1219_v8 = vcombine.high %v51_v6, %v51_v6  ;;  %v1220_v10 = vcombine.low %v52_v9, %v52_v9  ;;  %v1221_v11 = vcombine.high %v52_v9, %v52_v9  ;;  %v1587_v12 = vld [vmem:[#allocation2 + $0x278] sm:$0xff]   ;;  %v1591_v16 = vld [vmem:[#allocation2 + $0x270] sm:$0xff]  }
  0x33   :  { %1334 = vmatpush3.bf16.msra.mxu0 %v1537_v22  ;;  %v1581_v4 = vld [vmem:[#allocation2 + $0x100] sm:$0xff]   ;;  %v1588_v13 = vld [vmem:[#allocation2 + $0x2f8] sm:$0xff]   ;;  %v1592_v17 = vld [vmem:[#allocation2 + $0x2f0] sm:$0xff]  }
  0x34   :  { %1356 = vmatpush3.bf16.msra.mxu1 %v1538_v23  ;;  %1335 = vmatprep.subr.bf16.mxu0 %v1539_v24  ;;  %v1582_v5 = vld [vmem:[#allocation2 + $0x180] sm:$0xff]   ;;  %v1589_v14 = vld [vmem:[#allocation2 + $0x238] sm:$0xff]   ;;  %v1593_v18 = vld [vmem:[#allocation2 + $0x230] sm:$0xff]  }
  0x35   :  { %1357 = vmatprep.subr.bf16.mxu1 %v1540_v25  ;;  %v1590_v15 = vld [vmem:[#allocation2 + $0x2b8] sm:$0xff]   ;;  %v1594_v19 = vld [vmem:[#allocation2 + $0x2b0] sm:$0xff]   ;;  %v1595_v20 = vld [vmem:[#allocation2 + $0x268] sm:$0xff]  }
  0x36   :  { %v1596_v21 = vld [vmem:[#allocation2 + $0x2e8] sm:$0xff]   ;;  %v1599_v24 = vld [vmem:[#allocation2 + $0x260] sm:$0xff]   ;;  %v1607_v32 = vld [vmem:[#allocation2 + $0x250] sm:$0xff]  }
  0x37   :  { %1336 = vmatpush3.bf16.msra.mxu0 %v1541_v26  ;;  %v1597_v22 = vld [vmem:[#allocation2 + $0x228] sm:$0xff]   ;;  %v1600_v25 = vld [vmem:[#allocation2 + $0x2e0] sm:$0xff]   ;;  %v1608_v33 = vld [vmem:[#allocation2 + $0x2d0] sm:$0xff]  }
  0x38   :  { %1358 = vmatpush3.bf16.msra.mxu1 %v1542_v27  ;;  %1337 = vmatprep.subr.bf16.mxu0 %v1543_v28  ;;  %v1598_v23 = vld [vmem:[#allocation2 + $0x2a8] sm:$0xff]   ;;  %v1601_v26 = vld [vmem:[#allocation2 + $0x220] sm:$0xff]   ;;  %v1603_v28 = vld [vmem:[#allocation2 + $0x258] sm:$0xff]  }
  0x39   :  { %1359 = vmatprep.subr.bf16.mxu1 %v1544_v29  ;;  %v1602_v27 = vld [vmem:[#allocation2 + $0x2a0] sm:$0xff]   ;;  %v1604_v29 = vld [vmem:[#allocation2 + $0x2d8] sm:$0xff]   ;;  %v1610_v35 = vld [vmem:[#allocation2 + $0x290] sm:$0xff]  }
  0x3a   :  { %v1612_v37 = vld [vmem:[#allocation2 + $0x2c8] sm:$0xff]  }
  0x3b   :  { %1338 = vmatpush3.bf16.msra.mxu0 %v1545_v30  ;;  %v1605_v30 = vld [vmem:[#allocation2 + $0x218] sm:$0xff]  }
  0x3c   :  { %1360 = vmatpush3.bf16.msra.mxu1 %v1546_v31  ;;  %1367 = vmatprep.subr.bf16.mxu0 %v1551_v38  ;;  %v1606_v31 = vld [vmem:[#allocation2 + $0x298] sm:$0xff]   ;;  %v1613_v38 = vld [vmem:[#allocation2 + $0x208] sm:$0xff]  }
  0x3d   :  { %1389 = vmatprep.subr.bf16.mxu1 %v1552_v39  ;;  %v1614_v39 = vld [vmem:[#allocation2 + $0x288] sm:$0xff]  }
  0x3e   :  { %905 = vmatmul.mubr.bf16.vlgmr.msra.gmra.mxu0 %v1214_v34  ;;  %v1609_v34 = vld [vmem:[#allocation2 + $0x210] sm:$0xff]  }
  0x3f   :  { %945 = vmatmul.mubr.bf16.vlgmr.msra.gmra.mxu1 %v1216_v36  ;;  %1368 = vmatpush3.bf16.msra.mxu0 %v1553_v40  ;;  %v1611_v36 = vld [vmem:[#allocation2 + $0x248] sm:$0xff]   ;;  %v1615_v40 = vld [vmem:[#allocation2 + $0x240] sm:$0xff]  }
  0x40   :  { %1390 = vmatpush3.bf16.msra.mxu1 %v1554_v41  ;;  %1369 = vmatprep.subr.bf16.mxu0 %v1555_v42  ;;  %v1616_v41 = vld [vmem:[#allocation2 + $0x2c0] sm:$0xff]  }
  0x41   :  { %1391 = vmatprep.subr.bf16.mxu1 %v1556_v43  ;;  %984 = vmatprep.mubr.bf16.mxu0 %v1219_v8  ;;  %v1617_v42 = vld [vmem:[#allocation2 + $0x200] sm:$0xff]  }
  0x42   :  { %1024 = vmatprep.mubr.bf16.mxu1 %v1221_v11  ;;  %v1618_v43 = vld [vmem:[#allocation2 + $0x280] sm:$0xff]  }
  0x43   :  { %1370 = vmatpush3.bf16.msra.mxu0 %v1557_v44  ;;  %v53_v44 = vld [vmem:[%s1738_s0 + $0x20] sm:$0xff] }
  0x44   :  { %1392 = vmatpush3.bf16.msra.mxu1 %v1558_v45  ;;  %1371 = vmatprep.subr.bf16.mxu0 %v1559_v46  ;;  %v54_v45 = vld [vmem:[%s1738_s0 + $0x28] sm:$0xff]  ;;  %v1222_v46 = vcombine.low %v53_v44, %v53_v44 }
  0x45   :  { %1393 = vmatprep.subr.bf16.mxu1 %v1560_v47  ;;  %v1223_v47 = vcombine.high %v53_v44, %v53_v44 }
  0x47   :  { %1372 = vmatpush3.bf16.msra.mxu0 %v1561_v48  ;;  %v1224_v48 = vcombine.low %v54_v45, %v54_v45 }
  0x48   :  { %1394 = vmatpush3.bf16.msra.mxu1 %v1562_v49  ;;  %1373 = vmatprep.subr.bf16.mxu0 %v1563_v50  ;;  %v1225_v49 = vcombine.high %v54_v45, %v54_v45  ;;  %v1128_v50 = vld [vmem:[#allocation4 + $0x78] sm:$0xff] }
  0x49   :  { %1395 = vmatprep.subr.bf16.mxu1 %v1564_v51  ;;  %v1673_v51 = vmov 0.0  }
  0x4b   :  { %1374 = vmatpush3.bf16.msra.mxu0 %v1565_v52  ;;  %v1127_v52 = vld [vmem:[#allocation4 + $0x70] sm:$0xff] }
  0x4c   :  { %1396 = vmatpush3.bf16.msra.mxu1 %v1566_v53  ;;  %1375 = vmatprep.subr.bf16.mxu0 %v1567_v54  ;;  %v1126_v53 = vld [vmem:[#allocation4 + $0x68] sm:$0xff]  ;;  %v1125_v54 = vld [vmem:[#allocation4 + $0x60] sm:$0xff] }
  0x4d   :  { %1397 = vmatprep.subr.bf16.mxu1 %v1568_v55  ;;  %v1124_v55 = vld [vmem:[#allocation4 + $0x58] sm:$0xff] }
  0x4f   :  { %1376 = vmatpush3.bf16.msra.mxu0 %v1569_v56  ;;  %v1123_v56 = vld [vmem:[#allocation4 + $0x50] sm:$0xff] }
  0x50   :  { %1398 = vmatpush3.bf16.msra.mxu1 %v1570_v57  ;;  %1377 = vmatprep.subr.bf16.mxu0 %v1571_v58  ;;  %v1122_v57 = vld [vmem:[#allocation4 + $0x48] sm:$0xff]  ;;  %v1121_v58 = vld [vmem:[#allocation4 + $0x40] sm:$0xff] }
  0x51   :  { %1399 = vmatprep.subr.bf16.mxu1 %v1572_v59  ;;  %v1120_v59 = vld [vmem:[#allocation4 + $0x38] sm:$0xff] }
  0x53   :  { %1378 = vmatpush3.bf16.msra.mxu0 %v1573_v60  ;;  %v1119_v60 = vld [vmem:[#allocation4 + $0x30] sm:$0xff] }
  0x54   :  { %1400 = vmatpush3.bf16.msra.mxu1 %v1574_v61  ;;  %1379 = vmatprep.subr.bf16.mxu0 %v1575_v62  ;;  %v1118_v61 = vld [vmem:[#allocation4 + $0x28] sm:$0xff]  ;;  %v1117_v62 = vld [vmem:[#allocation4 + $0x20] sm:$0xff] }
  0x55   :  { %1401 = vmatprep.subr.bf16.mxu1 %v1576_v63  ;;  %v1116_v63 = vld [vmem:[#allocation4 + $0x18] sm:$0xff] }
  0x57   :  { %1380 = vmatpush3.bf16.msra.mxu0 %v1577_v0  ;;  %v1115_v0 = vld [vmem:[#allocation4 + $0x10] sm:$0xff] }
  0x58   :  { %1402 = vmatpush3.bf16.msra.mxu1 %v1578_v1  ;;  %1381 = vmatprep.subr.bf16.mxu0 %v1579_v2  ;;  %v1114_v1 = vld [vmem:[#allocation4 + $0x8] sm:$0xff]  ;;  %v1113_v2 = vld [vmem:[#allocation4] sm:$0xff] }
  0x59   :  { %1403 = vmatprep.subr.bf16.mxu1 %v1580_v3 }
  0x5b   :  { %1382 = vmatpush3.bf16.msra.mxu0 %v1581_v4 }
  0x5c   :  { %1404 = vmatpush3.bf16.msra.mxu1 %v1582_v5  ;;  %1411 = vmatprep.subr.bf16.mxu0 %v1587_v12 }
  0x5d   :  { %1433 = vmatprep.subr.bf16.mxu1 %v1588_v13 }
  0x5e   :  { %985 = vmatmul.mubr.bf16.vlgmr.msra.gmra.mxu0 %v1218_v7 }
  0x5f   :  { %1025 = vmatmul.mubr.bf16.vlgmr.msra.gmra.mxu1 %v1220_v10  ;;  %1412 = vmatpush3.bf16.msra.mxu0 %v1589_v14 }
  0x60   :  { %1434 = vmatpush3.bf16.msra.mxu1 %v1590_v15  ;;  %1413 = vmatprep.subr.bf16.mxu0 %v1591_v16 }
  0x61   :  { %1435 = vmatprep.subr.bf16.mxu1 %v1592_v17  ;;  %1064 = vmatprep.mubr.bf16.mxu0 %v1223_v47 }
  0x62   :  { %1104 = vmatprep.mubr.bf16.mxu1 %v1225_v49 }
  0x63   :  { %1414 = vmatpush3.bf16.msra.mxu0 %v1593_v18 }
  0x64   :  { %1436 = vmatpush3.bf16.msra.mxu1 %v1594_v19  ;;  %1415 = vmatprep.subr.bf16.mxu0 %v1595_v20  ;;  %v1213_v20 = vld [vmem:[%s1740_s2] ss:$0 sm:$0xff] }
  0x65   :  { %1437 = vmatprep.subr.bf16.mxu1 %v1596_v21 }
  0x67   :  { %1416 = vmatpush3.bf16.msra.mxu0 %v1597_v22 }
  0x68   :  { %1438 = vmatpush3.bf16.msra.mxu1 %v1598_v23  ;;  %1417 = vmatprep.subr.bf16.mxu0 %v1599_v24 }
  0x69   :  { %1439 = vmatprep.subr.bf16.mxu1 %v1600_v25 }
  0x6b   :  { %1418 = vmatpush3.bf16.msra.mxu0 %v1601_v26 }
  0x6c   :  { %1440 = vmatpush3.bf16.msra.mxu1 %v1602_v27  ;;  %1419 = vmatprep.subr.bf16.mxu0 %v1603_v28 }
  0x6d   :  { %1441 = vmatprep.subr.bf16.mxu1 %v1604_v29 }
  0x6f   :  { %1420 = vmatpush3.bf16.msra.mxu0 %v1605_v30 }
  0x70   :  { %1442 = vmatpush3.bf16.msra.mxu1 %v1606_v31  ;;  %1421 = vmatprep.subr.bf16.mxu0 %v1607_v32 }
  0x71   :  { %1443 = vmatprep.subr.bf16.mxu1 %v1608_v33 }
  0x73   :  { %1422 = vmatpush3.bf16.msra.mxu0 %v1609_v34 }
  0x74   :  { %1444 = vmatpush3.bf16.msra.mxu1 %v1610_v35  ;;  %1423 = vmatprep.subr.bf16.mxu0 %v1611_v36 }
  0x75   :  { %1445 = vmatprep.subr.bf16.mxu1 %v1612_v37 }
  0x77   :  { %1424 = vmatpush3.bf16.msra.mxu0 %v1613_v38 }
  0x78   :  { %1446 = vmatpush3.bf16.msra.mxu1 %v1614_v39  ;;  %1425 = vmatprep.subr.bf16.mxu0 %v1615_v40 }
  0x79   :  { %1447 = vmatprep.subr.bf16.mxu1 %v1616_v41  ;;  %v1322_v41 = vld [vmem:[%s1742_s4] ss:$0 sm:$0xff] }
  0x7b   :  { %1426 = vmatpush3.bf16.msra.mxu0 %v1617_v42 }
  0x7c   :  { %1448 = vmatpush3.bf16.msra.mxu1 %v1618_v43  ;;  %1472 = vmatprep.subr.mxu0 %v1673_v51 }
  0x7e   :  { %1065 = vmatmul.mubr.bf16.vlgmr.msra.gmra.mxu0 %v1222_v46 }
  0x7f   :  { %1105 = vmatmul.mubr.bf16.vlgmr.msra.gmra.mxu1 %v1224_v48  ;;  %1473 = vmatpush3.msra.mxu0 %v1128_v50 }
  0x80   :  { %1474 = vmatprep.subr.mxu0 %v1673_v51  ;;  %1504 = vmatprep.mubr.msk.f32.mxu0 %vm1674_vm0, %v1673_v51 }
  0x81   :  { %1475 = vmatpush3.msra.mxu0 %v1127_v52 }
  0x82   :  { %1476 = vmatprep.subr.mxu0 %v1673_v51 }
  0x83   :  { %1477 = vmatpush3.msra.mxu0 %v1126_v53 }
  0x84   :  { %1478 = vmatprep.subr.mxu0 %v1673_v51 }
  0x85   :  { %1479 = vmatpush3.msra.mxu0 %v1125_v54 }
  0x86   :  { %1480 = vmatprep.subr.mxu0 %v1673_v51 }
  0x87   :  { %1481 = vmatpush3.msra.mxu0 %v1124_v55 }
  0x88   :  { %1482 = vmatprep.subr.mxu0 %v1673_v51 }
  0x89   :  { %1483 = vmatpush3.msra.mxu0 %v1123_v56 }
  0x8a   :  { %1484 = vmatprep.subr.mxu0 %v1673_v51 }
  0x8b   :  { %1485 = vmatpush3.msra.mxu0 %v1122_v57 }
  0x8c   :  { %1486 = vmatprep.subr.mxu0 %v1673_v51 }
  0x8d   :  { %1487 = vmatpush3.msra.mxu0 %v1121_v58 }
  0x8e   :  { %1488 = vmatprep.subr.mxu0 %v1673_v51 }
  0x8f   :  { %1489 = vmatpush3.msra.mxu0 %v1120_v59 }
  0x90   :  { %1490 = vmatprep.subr.mxu0 %v1673_v51 }
  0x91   :  { %1491 = vmatpush3.msra.mxu0 %v1119_v60 }
  0x92   :  { %1492 = vmatprep.subr.mxu0 %v1673_v51 }
  0x93   :  { %1493 = vmatpush3.msra.mxu0 %v1118_v61 }
  0x94   :  { %1494 = vmatprep.subr.mxu0 %v1673_v51 }
  0x95   :  { %1495 = vmatpush3.msra.mxu0 %v1117_v62 }
  0x96   :  { %1496 = vmatprep.subr.mxu0 %v1673_v51 }
  0x97   :  { %1497 = vmatpush3.msra.mxu0 %v1116_v63 }
  0x98   :  { %1498 = vmatprep.subr.mxu0 %v1673_v51 }
  0x99   :  { %1499 = vmatpush3.msra.mxu0 %v1115_v0 }
  0x9a   :  { %1500 = vmatprep.subr.mxu0 %v1673_v51 }
  0x9b   :  { %1501 = vmatpush3.msra.mxu0 %v1114_v1 }
  0x9c   :  { %1502 = vmatprep.subr.mxu0 %v1673_v51 }
  0x9d   :  { %1503 = vmatpush3.msra.mxu0 %v1113_v2 }
  0xfe   :  { %v1339_v3 = vpop.f32.mrf.mxu0 }
  0xff   :  { %v1361_v4 = vpop.f32.mrf.mxu1 }
 0x100   :  { %v1340_v5 = vpop.f32.mrf.mxu0 }
 0x101   :  { %v1362_v6 = vpop.f32.mrf.mxu1  ;;  %v1341_v19 = vadd.f32 %v1340_v5, %v1339_v3 }
 0x102   :  { %v1342_v7 = vpop.f32.mrf.mxu0  ;;  %v1363_v22 = vadd.f32 %v1362_v6, %v1361_v4 }
 0x103   :  { %v1364_v8 = vpop.f32.mrf.mxu1  ;;  %v907_v21 = vadd.f32 %v1341_v19, %v1213_v20 }
 0x104   :  { %v1343_v9 = vpop.f32.mrf.mxu0 }
 0x105   :  { %v1365_v10 = vpop.f32.mrf.mxu1  ;;  %v947_v24 = vadd.f32 %v1363_v22, %v907_v21 }
 0x11e   :  { %v1383_v11 = vpop.f32.mrf.mxu0 }
 0x11f   :  { %v1405_v12 = vpop.f32.mrf.mxu1 }
 0x120   :  { %v1384_v13 = vpop.f32.mrf.mxu0 }
 0x121   :  { %v1406_v14 = vpop.f32.mrf.mxu1  ;;  %v1385_v23 = vadd.f32 %v1384_v13, %v1383_v11 }
 0x122   :  { %v1386_v15 = vpop.f32.mrf.mxu0  ;;  %v1407_v26 = vadd.f32 %v1406_v14, %v1405_v12 }
 0x123   :  { %v1408_v16 = vpop.f32.mrf.mxu1  ;;  %v987_v25 = vadd.f32 %v1385_v23, %v947_v24 }
 0x124   :  { %v1387_v17 = vpop.f32.mrf.mxu0 }
 0x125   :  { %v1409_v18 = vpop.f32.mrf.mxu1  ;;  %v1027_v30 = vadd.f32 %v1407_v26, %v987_v25 }
 0x13e   :  { %v1427_v27 = vpop.f32.mrf.mxu0 }
 0x13f   :  { %v1449_v28 = vpop.f32.mrf.mxu1 }
 0x140   :  { %v1428_v29 = vpop.f32.mrf.mxu0 }
 0x141   :  { %v1429_v31 = vadd.f32 %v1428_v29, %v1427_v27  ;;  %v1450_v32 = vpop.f32.mrf.mxu1 }
 0x142   :  { %v1430_v33 = vpop.f32.mrf.mxu0  ;;  %v1451_v35 = vadd.f32 %v1450_v32, %v1449_v28 }
 0x143   :  { %v1067_v34 = vadd.f32 %v1429_v31, %v1027_v30  ;;  %v1452_v36 = vpop.f32.mrf.mxu1 }
 0x144   :  { %v1431_v37 = vpop.f32.mrf.mxu0 }
 0x145   :  { %v1107_v38 = vadd.f32 %v1451_v35, %v1067_v34  ;;  %v1453_v39 = vpop.f32.mrf.mxu1 }
 0x147   :  { %v1112_v40 = vmax.f32 %v1107_v38, 0.0 }
 0x149   :  { %1505 = vmatmul.mubr.f32.vlgmr.msra.gmra.mxu0 %v1112_v40 }
 0x209   :  { %v1202_v42 = vpop.f32.mrf.mxu0 }
 0x20a   :  { %v1203_v43 = vadd.f32 %v1322_v41, %v1202_v42 }
 0x20b   :  { %v1506_v44 = vpop.f32.mrf.mxu0 }
 0x20c   :  { %1206 = vst [vmem:[%s1743_s5] sm:$0xff] %v1203_v43 }
 0x20d   :  { %1211 = vsyncpa [#allocation3], 1 }
 0x20e   :  { %1212 = vsyncpa [#allocation5], 1 }

</bundles_post_ra>
